<compile_context>
chip_gen: v7x
topology: tpu7x:2x2x1
jax: 0.10.0
libtpu: 0.0.40
codegen_flags: <defaults>
</compile_context>

<pallas_src>
import functools

import jax
import jax.numpy as jnp
import numpy as np
from jax.experimental import pallas as pl
from jax.experimental.pallas import tpu as pltpu


# ----------------------------------------------------------------------------
# Pallas kernel: one batch tile (R = B_TILE*H lane-packed rows) per grid step.
# ----------------------------------------------------------------------------
def _ghost_bottleneck_kernel(
    x_ref,            # (R, W*Cin)        bf16  lane-packed NHWC rows
    w1_ref,           # (W*Cin, W*Chid)   bf16  conv1 1x1 as kron(I_W, w1)
    bn1_ref,          # (2, W*Chid)       f32   [scale; bias]
    wp_ref,           # (W*Chid, W*Cp)    bf16  ghost primary 1x1
    bnp_ref,          # (2, W*Cp)         f32
    wdw_ref,          # (9, W*Cp)         f32   3x3 dw taps, lane-tiled, kw edges zeroed
    bndw_ref,         # (2, W*Cp)         f32
    w2_ref,           # (2*W*Cp, W*Cout)  bf16  conv2 on cat([x1,x2])[:, :hidden]
    bn2_ref,          # (2, W*Cout)       f32
    se_ref,           # (2*Cr+1, W*Cout)  f32   [fw1 pool-folded; fw2 tiled; fb2 tiled]
    fb1_ref,          # (Cr, 1)           f32
    mask_ref,         # (2, R, 1)         f32   [top-row mask; bottom-row mask] per image
    o_ref,            # (R, W*Cout)
    *, B, H, Cp, Cr, use_se, add_identity):
  bf16 = jnp.bfloat16
  R = B * H

  x = x_ref[...]                                                    # (R, W*Cin) bf16

  # conv1 (1x1) + bn1 + relu -- block-diagonal matmul, M = B_TILE*H rows.
  h = jnp.dot(x, w1_ref[...], preferred_element_type=jnp.float32)
  h = jnp.maximum(h * bn1_ref[0:1, :] + bn1_ref[1:2, :], 0.0)       # (R, W*Chid)

  # ghost primary 1x1 + bn + relu
  x1 = jnp.dot(h.astype(bf16), wp_ref[...], preferred_element_type=jnp.float32)
  x1 = jnp.maximum(x1 * bnp_ref[0:1, :] + bnp_ref[1:2, :], 0.0)     # (R, W*Cp)
  L = x1.shape[1]

  # ghost cheap op: 3x3 depthwise conv via XLU rolls -- no pads / concats / slices.
  # Vertical taps: sublane rolls of the whole (R, L) slab; per-image top/bottom rows
  # zeroed by the precomputed (R,1) masks so images never bleed into each other.
  # Horizontal taps: lane rolls by Cp; the wrapped lane group is already zeroed
  # inside the pre-tiled wdw rows.
  mtop = mask_ref[0]                                                # (R, 1)
  mbot = mask_ref[1]
  src = (pltpu.roll(x1, shift=1, axis=0) * mtop,      # source row h-1
         x1,                                          # source row h
         pltpu.roll(x1, shift=R - 1, axis=0) * mbot)  # source row h+1
  x2 = None
  for kh in range(3):
    for kw in range(3):
      dw = kw - 1
      t = src[kh] if dw == 0 else pltpu.roll(
          src[kh], shift=(L - dw * Cp) % L, axis=1)
      term = t * wdw_ref[kh * 3 + kw, :]
      x2 = term if x2 is None else x2 + term
  x2 = jnp.maximum(x2 * bndw_ref[0:1, :] + bndw_ref[1:2, :], 0.0)   # (R, W*Cp)

  # conv2 (1x1) on cat([x1, x2], ch)[:, :hidden] == one K = 2*W*Cp matmul against
  # the stacked block-diag weight (channel truncation folded into zero rows).
  xcat = jnp.concatenate([x1.astype(bf16), x2.astype(bf16)], axis=-1)
  out = jnp.dot(xcat, w2_ref[...], preferred_element_type=jnp.float32)
  out = out * bn2_ref[0:1, :] + bn2_ref[1:2, :]                     # (R, W*Cout)
  Lo = out.shape[1]

  # SE: per-image GAP (segmented sublane sum) + two tiny FCs done on VPU/XLU
  # (Cr is tiny), so no M=1 MXU push/pop round-trips sit on the critical path.
  if use_se:
    out3 = out.reshape(B, H, Lo)
    ysum = jnp.sum(out3, axis=1)                                    # (B, W*Cout)
    acc = se_ref[2 * Cr:2 * Cr + 1, :]                              # fb2, (1, W*Cout)
    for j in range(Cr):
      yj = jnp.sum(ysum * se_ref[j, :], axis=-1, keepdims=True)     # (B, 1), /(H*W) folded
      yj = jnp.maximum(yj + fb1_ref[j:j + 1, :], 0.0)
      acc = acc + yj * se_ref[Cr + j, :]
    sc = jnp.clip(acc, 0.0, 1.0)                                    # (B, W*Cout)
    out = (out3 * sc[:, None, :]).reshape(R, Lo)

  # residual: F.interpolate(identity, size=out.shape[2:]) is the identity here
  # because every conv in this module is stride-1 (spatial size preserved).
  if add_identity:
    out = out + x.astype(jnp.float32)

  o_ref[...] = out.astype(o_ref.dtype)


# ----------------------------------------------------------------------------
# Wrapper-side parameter packing: layout plumbing done once, outside the kernel.
# ----------------------------------------------------------------------------
def pack_params(p, H, W):
  """Fold lane packing, block-diagonalization, conv2 slice and SE pooling into weights."""
  f32, bf16 = jnp.float32, jnp.bfloat16
  eye_w = jnp.eye(W, dtype=f32)

  def bdiag(w):                      # (Ci, Co) -> (W*Ci, W*Co) block-diagonal
    # TODO(synk): for production GhostNet widths (W*C >> a few hundred lanes) this
    # W^2 scaling blows VMEM (esp. v7x 64 MiB); switch to a channel-major (rows, C)
    # layout with a dense (Ci, Co) matmul in that regime.
    return jnp.kron(eye_w, w.astype(f32))

  def lanes(v):                      # (1, C) -> (1, W*C) lane-tiled
    return jnp.tile(jnp.reshape(v, (1, -1)).astype(f32), (1, W))

  def bn(s, b):                      # pack scale/bias as one (2, W*C) array
    return jnp.concatenate([lanes(s), lanes(b)], axis=0)

  Cp = p["wp"].shape[1]
  Cout = p["w2a"].shape[1]
  c_rem = p["w2b"].shape[0]
  Cr = p["fw1"].shape[1]

  kp = {}
  kp["w1"] = bdiag(p["w1"]).astype(bf16)
  kp["bn1"] = bn(p["s1"], p["b1"])
  kp["wp"] = bdiag(p["wp"]).astype(bf16)
  kp["bnp"] = bn(p["sp"], p["bp"])

  # Depthwise 3x3: per-tap lane-tiled rows; horizontal boundary masks folded in.
  lane_w = jnp.arange(W * Cp) // Cp                      # lane -> spatial w index
  rows = []
  for kh in range(3):
    for kw in range(3):
      r = jnp.tile(p["wdw"][kh, kw].astype(f32), (W,))   # (W*Cp,)
      if kw == 0:                                        # source w-1: w==0 is OOB
        r = jnp.where(lane_w == 0, 0.0, r)
      elif kw == 2:                                      # source w+1: w==W-1 is OOB
        r = jnp.where(lane_w == W - 1, 0.0, r)
      rows.append(r)
  kp["wdw"] = jnp.stack(rows, axis=0)                    # (9, W*Cp)
  kp["bndw"] = bn(p["sdw"], p["bdw"])

  # conv2: zero-pad the "cheap branch" half to Cp rows (folds the [:, :hidden] slice)
  # and stack both halves so the kernel runs one K = 2*W*Cp matmul.
  w2b_pad = jnp.zeros((Cp, Cout), f32).at[:c_rem].set(p["w2b"].astype(f32))
  kp["w2"] = jnp.concatenate([bdiag(p["w2a"]), bdiag(w2b_pad)], axis=0).astype(bf16)
  kp["bn2"] = bn(p["s2"], p["b2"])

  # SE pack: rows [0,Cr) = lane-tiled fw1[:, j] / (H*W) (GAP fold), rows [Cr,2Cr) =
  # lane-tiled fw2[j, :], row 2Cr = lane-tiled fb2.  fb1 kept as a (Cr, 1) column.
  fw1t = jnp.tile(p["fw1"].T.astype(f32), (1, W)) / float(H * W)    # (Cr, W*Cout)
  fw2t = jnp.tile(p["fw2"].astype(f32), (1, W))                     # (Cr, W*Cout)
  fb2t = jnp.tile(p["fb2"].astype(f32), (1, W))                     # (1, W*Cout)
  kp["se"] = jnp.concatenate([fw1t, fw2t, fb2t], axis=0)
  kp["fb1"] = p["fb1"].reshape(Cr, 1).astype(f32)
  return kp


def _pick_batch_tile(n, h, target_rows=512):
  """Largest divisor of n whose row count bt*h stays near an MXU-friendly M (~512)."""
  bt = max(1, min(n, max(1, target_rows // max(h, 1))))
  while n % bt:
    bt -= 1
  if bt < n and (bt * h) % 8 != 0:
    bt = n            # keep block rows sublane-aligned (or equal to full array dim)
  return bt


def ghost_bottleneck_packed(x_packed, kp, *, W, Cp, Cout, use_se, add_identity,
                            b_tile=None, out_dtype=jnp.float32):
  """x_packed: (N, H, W*Cin) bf16 lane-packed NHWC.  Returns (N, H, W*Cout)."""
  N, H, L_in = x_packed.shape
  Cin = L_in // W
  Chid = kp["w1"].shape[1] // W
  L_p = W * Cp
  L_out = W * Cout
  Cr = kp["fb1"].shape[0]

  bt = _pick_batch_tile(N, H) if b_tile is None else b_tile
  assert N % bt == 0, "batch tile must divide N"
  R = bt * H
  grid = (N // bt,)

  x2d = x_packed.reshape(N * H, L_in)

  # Per-image top/bottom row masks for the vertical depthwise taps (row r hosts
  # image row r % H); same pattern for every grid step, so built once here.
  rows = jnp.arange(R) % H
  masks = jnp.stack([(rows > 0).astype(jnp.float32),
                     (rows < H - 1).astype(jnp.float32)], axis=0)[:, :, None]  # (2,R,1)

  names = ("w1", "bn1", "wp", "bnp", "wdw", "bndw", "w2", "bn2", "se", "fb1")
  weights = tuple(kp[n] for n in names)

  kernel = functools.partial(_ghost_bottleneck_kernel, B=bt, H=H, Cp=Cp, Cr=Cr,
                             use_se=use_se, add_identity=add_identity)
  vmem = pl.BlockSpec(memory_space=pltpu.MemorySpace.VMEM)

  flops = int(N * H * W * (2 * Cin * Chid + 2 * Chid * Cp + 18 * Cp
                           + 4 * Cp * Cout + 4 * Cout))
  out_isize = jnp.dtype(out_dtype).itemsize
  weight_bytes = sum(int(w.size) * w.dtype.itemsize for w in weights)
  bytes_accessed = int(x2d.size * x2d.dtype.itemsize + N * H * L_out * out_isize
                       + weight_bytes + masks.size * 4)

  # VMEM budget: f32 intermediates + double-buffered x/out blocks + weights (x2 in
  # case the pipeline double-buffers the constant inputs).  Capped for v7x (64 MiB).
  act_bytes = R * (W * Chid + 6 * L_p + 3 * L_out) * 4
  io_bytes = 2 * (R * L_in * 2 + R * L_out * out_isize)
  vmem_limit = int(min(max(32 << 20, 2 * (act_bytes + io_bytes + 2 * weight_bytes)),
                       48 << 20))

  out2d = pl.pallas_call(
      kernel,
      out_shape=jax.ShapeDtypeStruct((N * H, L_out), out_dtype),
      grid=grid,
      in_specs=[pl.BlockSpec((R, L_in), lambda i: (i, 0))]
               + [vmem] * len(weights) + [vmem],
      out_specs=pl.BlockSpec((R, L_out), lambda i: (i, 0)),
      compiler_params=pltpu.CompilerParams(
          dimension_semantics=("parallel",), vmem_limit_bytes=vmem_limit),
      cost_estimate=pl.CostEstimate(flops=flops, transcendentals=0,
                                    bytes_accessed=bytes_accessed),
  )(x2d, *weights, masks)
  return out2d.reshape(N, H, L_out)


def ghost_bottleneck(x_nchw, p, *, stride=1, use_se=True):
  """PyTorch-parity (NCHW) entry point.  In an NHWC/lane-packed pipeline call
  ghost_bottleneck_packed directly and the two XLA transposes below vanish."""
  N, Cin, H, W = x_nchw.shape
  Cp = p["wp"].shape[1]
  Cout = p["w2a"].shape[1]
  add_identity = (stride == 1 and Cin == Cout)

  kp = pack_params(p, H, W)
  x_packed = (jnp.transpose(x_nchw, (0, 2, 3, 1))
              .reshape(N, H, W * Cin).astype(jnp.bfloat16))
  out = ghost_bottleneck_packed(x_packed, kp, W=W, Cp=Cp, Cout=Cout,
                                use_se=use_se, add_identity=add_identity)
  return jnp.transpose(out.reshape(N, H, W, Cout), (0, 3, 1, 2))


# ----------------------------------------------------------------------------
# Deterministic synthetic parameters (matching the nn.Module shapes).
# ----------------------------------------------------------------------------
def init_params(key, cin, chid, cout, se_reduction=4):
  eps = 1e-5

  def folded_bn(k, c):
    k1, k2, k3, k4 = jax.random.split(k, 4)
    gamma = 1.0 + 0.1 * jax.random.normal(k1, (c,), jnp.float32)
    beta = 0.1 * jax.random.normal(k2, (c,), jnp.float32)
    mean = 0.1 * jax.random.normal(k3, (c,), jnp.float32)
    var = jax.random.uniform(k4, (c,), jnp.float32, 0.5, 1.5)
    scale = gamma / jnp.sqrt(var + eps)
    bias = beta - mean * scale
    return scale.reshape(1, c), bias.reshape(1, c)

  cp = -(-chid // 2)          # init_channels = ceil(hidden / ratio), ratio=2
  c_rem = chid - cp           # channels of the "cheap" branch actually kept
  cr = max(cout // se_reduction, 1)

  ks = jax.random.split(key, 12)
  w1 = 0.2 * jax.random.normal(ks[0], (cin, chid), jnp.float32)     # conv1 1x1
  s1, b1 = folded_bn(ks[1], chid)
  wp = 0.2 * jax.random.normal(ks[2], (chid, cp), jnp.float32)      # ghost primary 1x1
  sp, bp = folded_bn(ks[3], cp)
  wdw = 0.2 * jax.random.normal(ks[4], (3, 3, cp), jnp.float32)     # ghost cheap 3x3 dw
  sdw, bdw = folded_bn(ks[5], cp)
  w2 = 0.2 * jax.random.normal(ks[6], (chid, cout), jnp.float32)    # conv2 1x1
  s2, b2 = folded_bn(ks[7], cout)
  fw1 = 0.2 * jax.random.normal(ks[8], (cout, cr), jnp.float32)     # SE fc1
  fb1 = 0.1 * jax.random.normal(ks[9], (1, cr), jnp.float32)
  fw2 = 0.2 * jax.random.normal(ks[10], (cr, cout), jnp.float32)    # SE fc2
  fb2 = 0.1 * jax.random.normal(ks[11], (1, cout), jnp.float32)

  return dict(w1=w1, s1=s1, b1=b1, wp=wp, sp=sp, bp=bp,
              wdw=wdw, sdw=sdw, bdw=bdw,
              w2a=w2[:cp], w2b=w2[cp:cp + c_rem], s2=s2, b2=b2,
              fw1=fw1, fb1=fb1, fw2=fw2, fb2=fb2)


# ----------------------------------------------------------------------------
# Pure-JAX reference (module math; mirrors the kernel's bf16 I/O rounding so the
# comparison isolates kernel-logic errors).
# ----------------------------------------------------------------------------
def ghost_bottleneck_ref(x_nchw, p, *, stride=1, use_se=True):
  f32, bf16 = jnp.float32, jnp.bfloat16
  q = lambda a: a.astype(bf16).astype(f32)
  x = q(jnp.transpose(x_nchw, (0, 2, 3, 1)).astype(f32))
  N, H, W, Cin = x.shape
  h = jnp.maximum(jnp.einsum("nhwc,cd->nhwd", x, q(p["w1"])) * p["s1"][0] + p["b1"][0], 0.0)
  x1 = jnp.maximum(jnp.einsum("nhwc,cd->nhwd", q(h), q(p["wp"])) * p["sp"][0] + p["bp"][0], 0.0)
  xp = jnp.pad(x1, ((0, 0), (1, 1), (1, 1), (0, 0)))
  x2 = sum(xp[:, kh:kh + H, kw:kw + W, :] * p["wdw"][kh, kw]
           for kh in range(3) for kw in range(3))
  x2 = jnp.maximum(x2 * p["sdw"][0] + p["bdw"][0], 0.0)
  c_rem = p["w2b"].shape[0]
  out = (jnp.einsum("nhwc,cd->nhwd", q(x1), q(p["w2a"]))
         + jnp.einsum("nhwc,cd->nhwd", q(x2[..., :c_rem]), q(p["w2b"])))
  out = out * p["s2"][0] + p["b2"][0]
  if use_se:
    y = out.mean(axis=(1, 2))
    y1 = jnp.maximum(y @ p["fw1"] + p["fb1"][0], 0.0)
    y2 = jnp.clip(y1 @ p["fw2"] + p["fb2"][0], 0.0, 1.0)
    out = out * y2[:, None, None, :]
  if stride == 1 and Cin == out.shape[-1]:
    out = out + x
  return jnp.transpose(out, (0, 3, 1, 2))


if __name__ == "__main__":
  # GhostBottleneck(input_channels=8, hidden_channels=16, output_channels=8,
  #                 kernel_size=1, stride=1, use_se=True);  x: (2, 8, 16, 16) NCHW
  N, Cin, H, W = 2, 8, 16, 16
  Chid, Cout = 16, 8
  stride, use_se = 1, True

  key = jax.random.PRNGKey(0)
  kx, kparam = jax.random.split(key)
  x = jax.random.normal(kx, (N, Cin, H, W), jnp.float32)
  params = init_params(kparam, Cin, Chid, Cout, se_reduction=4)

  fwd = jax.jit(functools.partial(ghost_bottleneck, stride=stride, use_se=use_se))
  out = jax.block_until_ready(fwd(x, params))

  ref = jax.block_until_ready(
      ghost_bottleneck_ref(x, params, stride=stride, use_se=use_se))
  assert out.shape == (N, Cout, H, W)
  np.testing.assert_allclose(np.asarray(out), np.asarray(ref), rtol=1e-3, atol=1e-3)

  print("KERNEL_OK")
</pallas_src>

<mosaic_0001>
module attributes {stable_mosaic.version = 11 : i64} {
  func.func @_ghost_bottleneck_kernel(%arg0: i32, %arg1: memref<32x128xbf16, #tpu.memory_space<vmem>>, %arg2: memref<128x256xbf16, #tpu.memory_space<vmem>>, %arg3: memref<2x256xf32, #tpu.memory_space<vmem>>, %arg4: memref<256x128xbf16, #tpu.memory_space<vmem>>, %arg5: memref<2x128xf32, #tpu.memory_space<vmem>>, %arg6: memref<9x128xf32, #tpu.memory_space<vmem>>, %arg7: memref<2x128xf32, #tpu.memory_space<vmem>>, %arg8: memref<256x128xbf16, #tpu.memory_space<vmem>>, %arg9: memref<2x128xf32, #tpu.memory_space<vmem>>, %arg10: memref<5x128xf32, #tpu.memory_space<vmem>>, %arg11: memref<2x1xf32, #tpu.memory_space<vmem>>, %arg12: memref<2x32x1xf32, #tpu.memory_space<vmem>>, %arg13: memref<32x128xf32, #tpu.memory_space<vmem>>) attributes {dimension_semantics = [#tpu.dimension_semantics<parallel>], iteration_bounds = array<i64: 1>, scalar_prefetch = 0 : i64, scratch_operands = 0 : i64, tpu.core_type = #tpu.core_type<tc>, window_params = [{transform_indices = @transform_0, window_bounds = array<i64: 32, 128>}, {pipeline_mode = #tpu.pipeline_mode<synchronous>, transform_indices = @transform_1, window_bounds = array<i64: 128, 256>}, {pipeline_mode = #tpu.pipeline_mode<synchronous>, transform_indices = @transform_2, window_bounds = array<i64: 2, 256>}, {pipeline_mode = #tpu.pipeline_mode<synchronous>, transform_indices = @transform_3, window_bounds = array<i64: 256, 128>}, {pipeline_mode = #tpu.pipeline_mode<synchronous>, transform_indices = @transform_4, window_bounds = array<i64: 2, 128>}, {pipeline_mode = #tpu.pipeline_mode<synchronous>, transform_indices = @transform_5, window_bounds = array<i64: 9, 128>}, {pipeline_mode = #tpu.pipeline_mode<synchronous>, transform_indices = @transform_6, window_bounds = array<i64: 2, 128>}, {pipeline_mode = #tpu.pipeline_mode<synchronous>, transform_indices = @transform_7, window_bounds = array<i64: 256, 128>}, {pipeline_mode = #tpu.pipeline_mode<synchronous>, transform_indices = @transform_8, window_bounds = array<i64: 2, 128>}, {pipeline_mode = #tpu.pipeline_mode<synchronous>, transform_indices = @transform_9, window_bounds = array<i64: 5, 128>}, {pipeline_mode = #tpu.pipeline_mode<synchronous>, transform_indices = @transform_10, window_bounds = array<i64: 2, 1>}, {pipeline_mode = #tpu.pipeline_mode<synchronous>, transform_indices = @transform_11, window_bounds = array<i64: 2, 32, 1>}, {transform_indices = @transform_12, window_bounds = array<i64: 32, 128>}]} {
    %c0 = arith.constant 0 : index
    %c0_0 = arith.constant 0 : index
    %0 = vector.load %arg1[%c0, %c0_0] : memref<32x128xbf16, #tpu.memory_space<vmem>>, vector<32x128xbf16>
    %c0_1 = arith.constant 0 : index
    %c0_2 = arith.constant 0 : index
    %1 = vector.load %arg2[%c0_1, %c0_2] : memref<128x256xbf16, #tpu.memory_space<vmem>>, vector<128x256xbf16>
    %cst = arith.constant dense<0.000000e+00> : vector<32x256xf32>
    %2 = tpu.matmul %0, %1, %cst {dimension_numbers = #tpu.dot_dimension_numbers<[1], [0], [0], [1], [0, 0, 1, 1], [], []>} : vector<32x128xbf16>, vector<128x256xbf16>, vector<32x256xf32> -> vector<32x256xf32>
    %c0_3 = arith.constant 0 : index
    %c0_4 = arith.constant 0 : index
    %3 = vector.load %arg3[%c0_3, %c0_4] : memref<2x256xf32, #tpu.memory_space<vmem>>, vector<1x256xf32>
    %4 = vector.broadcast %3 : vector<1x256xf32> to vector<32x256xf32>
    %5 = arith.mulf %2, %4 : vector<32x256xf32>
    %c1 = arith.constant 1 : index
    %c0_5 = arith.constant 0 : index
    %6 = vector.load %arg3[%c1, %c0_5] : memref<2x256xf32, #tpu.memory_space<vmem>>, vector<1x256xf32>
    %7 = vector.broadcast %6 : vector<1x256xf32> to vector<32x256xf32>
    %8 = arith.addf %5, %7 : vector<32x256xf32>
    %cst_6 = arith.constant 0.000000e+00 : f32
    %9 = vector.broadcast %cst_6 : f32 to vector<32x256xf32>
    %10 = arith.maximumf %8, %9 : vector<32x256xf32>
    %11 = arith.truncf %10 : vector<32x256xf32> to vector<32x256xbf16>
    %c0_7 = arith.constant 0 : index
    %c0_8 = arith.constant 0 : index
    %12 = vector.load %arg4[%c0_7, %c0_8] : memref<256x128xbf16, #tpu.memory_space<vmem>>, vector<256x128xbf16>
    %cst_9 = arith.constant dense<0.000000e+00> : vector<32x128xf32>
    %13 = tpu.matmul %11, %12, %cst_9 {dimension_numbers = #tpu.dot_dimension_numbers<[1], [0], [0], [1], [0, 0, 1, 1], [], []>} : vector<32x256xbf16>, vector<256x128xbf16>, vector<32x128xf32> -> vector<32x128xf32>
    %c0_10 = arith.constant 0 : index
    %c0_11 = arith.constant 0 : index
    %14 = vector.load %arg5[%c0_10, %c0_11] : memref<2x128xf32, #tpu.memory_space<vmem>>, vector<1x128xf32>
    %15 = vector.broadcast %14 : vector<1x128xf32> to vector<32x128xf32>
    %16 = arith.mulf %13, %15 : vector<32x128xf32>
    %c1_12 = arith.constant 1 : index
    %c0_13 = arith.constant 0 : index
    %17 = vector.load %arg5[%c1_12, %c0_13] : memref<2x128xf32, #tpu.memory_space<vmem>>, vector<1x128xf32>
    %18 = vector.broadcast %17 : vector<1x128xf32> to vector<32x128xf32>
    %19 = arith.addf %16, %18 : vector<32x128xf32>
    %cst_14 = arith.constant 0.000000e+00 : f32
    %20 = vector.broadcast %cst_14 : f32 to vector<32x128xf32>
    %21 = arith.maximumf %19, %20 : vector<32x128xf32>
    %c0_15 = arith.constant 0 : index
    %c0_16 = arith.constant 0 : index
    %c0_17 = arith.constant 0 : index
    %22 = vector.load %arg12[%c0_15, %c0_16, %c0_17] : memref<2x32x1xf32, #tpu.memory_space<vmem>>, vector<1x32x1xf32>
    %23 = vector.shape_cast %22 : vector<1x32x1xf32> to vector<32x1xf32>
    %c1_18 = arith.constant 1 : index
    %c0_19 = arith.constant 0 : index
    %c0_20 = arith.constant 0 : index
    %24 = vector.load %arg12[%c1_18, %c0_19, %c0_20] : memref<2x32x1xf32, #tpu.memory_space<vmem>>, vector<1x32x1xf32>
    %25 = vector.shape_cast %24 : vector<1x32x1xf32> to vector<32x1xf32>
    %c1_i32 = arith.constant 1 : i32
    %26 = tpu.dynamic_rotate %21 by %c1_i32 dim 0 : vector<32x128xf32>, i32 -> vector<32x128xf32>
    %27 = vector.broadcast %23 : vector<32x1xf32> to vector<32x128xf32>
    %28 = arith.mulf %26, %27 : vector<32x128xf32>
    %c31_i32 = arith.constant 31 : i32
    %29 = tpu.dynamic_rotate %21 by %c31_i32 dim 0 : vector<32x128xf32>, i32 -> vector<32x128xf32>
    %30 = vector.broadcast %25 : vector<32x1xf32> to vector<32x128xf32>
    %31 = arith.mulf %29, %30 : vector<32x128xf32>
    %c8_i32 = arith.constant 8 : i32
    %32 = tpu.dynamic_rotate %28 by %c8_i32 dim 1 : vector<32x128xf32>, i32 -> vector<32x128xf32>
    %c0_21 = arith.constant 0 : index
    %c0_22 = arith.constant 0 : index
    %33 = vector.load %arg6[%c0_21, %c0_22] : memref<9x128xf32, #tpu.memory_space<vmem>>, vector<1x128xf32>
    %34 = vector.shape_cast %33 : vector<1x128xf32> to vector<128xf32>
    %35 = vector.shape_cast %34 : vector<128xf32> to vector<1x128xf32>
    %36 = vector.broadcast %35 : vector<1x128xf32> to vector<32x128xf32>
    %37 = arith.mulf %32, %36 : vector<32x128xf32>
    %c1_23 = arith.constant 1 : index
    %c0_24 = arith.constant 0 : index
    %38 = vector.load %arg6[%c1_23, %c0_24] : memref<9x128xf32, #tpu.memory_space<vmem>>, vector<1x128xf32>
    %39 = vector.shape_cast %38 : vector<1x128xf32> to vector<128xf32>
    %40 = vector.shape_cast %39 : vector<128xf32> to vector<1x128xf32>
    %41 = vector.broadcast %40 : vector<1x128xf32> to vector<32x128xf32>
    %42 = arith.mulf %28, %41 : vector<32x128xf32>
    %43 = arith.addf %37, %42 : vector<32x128xf32>
    %c120_i32 = arith.constant 120 : i32
    %44 = tpu.dynamic_rotate %28 by %c120_i32 dim 1 : vector<32x128xf32>, i32 -> vector<32x128xf32>
    %c2 = arith.constant 2 : index
    %c0_25 = arith.constant 0 : index
    %45 = vector.load %arg6[%c2, %c0_25] : memref<9x128xf32, #tpu.memory_space<vmem>>, vector<1x128xf32>
    %46 = vector.shape_cast %45 : vector<1x128xf32> to vector<128xf32>
    %47 = vector.shape_cast %46 : vector<128xf32> to vector<1x128xf32>
    %48 = vector.broadcast %47 : vector<1x128xf32> to vector<32x128xf32>
    %49 = arith.mulf %44, %48 : vector<32x128xf32>
    %50 = arith.addf %43, %49 : vector<32x128xf32>
    %c8_i32_26 = arith.constant 8 : i32
    %51 = tpu.dynamic_rotate %21 by %c8_i32_26 dim 1 : vector<32x128xf32>, i32 -> vector<32x128xf32>
    %c3 = arith.constant 3 : index
    %c0_27 = arith.constant 0 : index
    %52 = vector.load %arg6[%c3, %c0_27] : memref<9x128xf32, #tpu.memory_space<vmem>>, vector<1x128xf32>
    %53 = vector.shape_cast %52 : vector<1x128xf32> to vector<128xf32>
    %54 = vector.shape_cast %53 : vector<128xf32> to vector<1x128xf32>
    %55 = vector.broadcast %54 : vector<1x128xf32> to vector<32x128xf32>
    %56 = arith.mulf %51, %55 : vector<32x128xf32>
    %57 = arith.addf %50, %56 : vector<32x128xf32>
    %c4 = arith.constant 4 : index
    %c0_28 = arith.constant 0 : index
    %58 = vector.load %arg6[%c4, %c0_28] : memref<9x128xf32, #tpu.memory_space<vmem>>, vector<1x128xf32>
    %59 = vector.shape_cast %58 : vector<1x128xf32> to vector<128xf32>
    %60 = vector.shape_cast %59 : vector<128xf32> to vector<1x128xf32>
    %61 = vector.broadcast %60 : vector<1x128xf32> to vector<32x128xf32>
    %62 = arith.mulf %21, %61 : vector<32x128xf32>
    %63 = arith.addf %57, %62 : vector<32x128xf32>
    %c120_i32_29 = arith.constant 120 : i32
    %64 = tpu.dynamic_rotate %21 by %c120_i32_29 dim 1 : vector<32x128xf32>, i32 -> vector<32x128xf32>
    %c5 = arith.constant 5 : index
    %c0_30 = arith.constant 0 : index
    %65 = vector.load %arg6[%c5, %c0_30] : memref<9x128xf32, #tpu.memory_space<vmem>>, vector<1x128xf32>
    %66 = vector.shape_cast %65 : vector<1x128xf32> to vector<128xf32>
    %67 = vector.shape_cast %66 : vector<128xf32> to vector<1x128xf32>
    %68 = vector.broadcast %67 : vector<1x128xf32> to vector<32x128xf32>
    %69 = arith.mulf %64, %68 : vector<32x128xf32>
    %70 = arith.addf %63, %69 : vector<32x128xf32>
    %c8_i32_31 = arith.constant 8 : i32
    %71 = tpu.dynamic_rotate %31 by %c8_i32_31 dim 1 : vector<32x128xf32>, i32 -> vector<32x128xf32>
    %c6 = arith.constant 6 : index
    %c0_32 = arith.constant 0 : index
    %72 = vector.load %arg6[%c6, %c0_32] : memref<9x128xf32, #tpu.memory_space<vmem>>, vector<1x128xf32>
    %73 = vector.shape_cast %72 : vector<1x128xf32> to vector<128xf32>
    %74 = vector.shape_cast %73 : vector<128xf32> to vector<1x128xf32>
    %75 = vector.broadcast %74 : vector<1x128xf32> to vector<32x128xf32>
    %76 = arith.mulf %71, %75 : vector<32x128xf32>
    %77 = arith.addf %70, %76 : vector<32x128xf32>
    %c7 = arith.constant 7 : index
    %c0_33 = arith.constant 0 : index
    %78 = vector.load %arg6[%c7, %c0_33] : memref<9x128xf32, #tpu.memory_space<vmem>>, vector<1x128xf32>
    %79 = vector.shape_cast %78 : vector<1x128xf32> to vector<128xf32>
    %80 = vector.shape_cast %79 : vector<128xf32> to vector<1x128xf32>
    %81 = vector.broadcast %80 : vector<1x128xf32> to vector<32x128xf32>
    %82 = arith.mulf %31, %81 : vector<32x128xf32>
    %83 = arith.addf %77, %82 : vector<32x128xf32>
    %c120_i32_34 = arith.constant 120 : i32
    %84 = tpu.dynamic_rotate %31 by %c120_i32_34 dim 1 : vector<32x128xf32>, i32 -> vector<32x128xf32>
    %c8 = arith.constant 8 : index
    %c0_35 = arith.constant 0 : index
    %85 = vector.load %arg6[%c8, %c0_35] : memref<9x128xf32, #tpu.memory_space<vmem>>, vector<1x128xf32>
    %86 = vector.shape_cast %85 : vector<1x128xf32> to vector<128xf32>
    %87 = vector.shape_cast %86 : vector<128xf32> to vector<1x128xf32>
    %88 = vector.broadcast %87 : vector<1x128xf32> to vector<32x128xf32>
    %89 = arith.mulf %84, %88 : vector<32x128xf32>
    %90 = arith.addf %83, %89 : vector<32x128xf32>
    %c0_36 = arith.constant 0 : index
    %c0_37 = arith.constant 0 : index
    %91 = vector.load %arg7[%c0_36, %c0_37] : memref<2x128xf32, #tpu.memory_space<vmem>>, vector<1x128xf32>
    %92 = vector.broadcast %91 : vector<1x128xf32> to vector<32x128xf32>
    %93 = arith.mulf %90, %92 : vector<32x128xf32>
    %c1_38 = arith.constant 1 : index
    %c0_39 = arith.constant 0 : index
    %94 = vector.load %arg7[%c1_38, %c0_39] : memref<2x128xf32, #tpu.memory_space<vmem>>, vector<1x128xf32>
    %95 = vector.broadcast %94 : vector<1x128xf32> to vector<32x128xf32>
    %96 = arith.addf %93, %95 : vector<32x128xf32>
    %cst_40 = arith.constant 0.000000e+00 : f32
    %97 = vector.broadcast %cst_40 : f32 to vector<32x128xf32>
    %98 = arith.maximumf %96, %97 : vector<32x128xf32>
    %99 = arith.truncf %21 : vector<32x128xf32> to vector<32x128xbf16>
    %100 = arith.truncf %98 : vector<32x128xf32> to vector<32x128xbf16>
    %101 = tpu.concatenate %99, %100 in 1 : vector<32x128xbf16>, vector<32x128xbf16> -> vector<32x256xbf16>
    %c0_41 = arith.constant 0 : index
    %c0_42 = arith.constant 0 : index
    %102 = vector.load %arg8[%c0_41, %c0_42] : memref<256x128xbf16, #tpu.memory_space<vmem>>, vector<256x128xbf16>
    %cst_43 = arith.constant dense<0.000000e+00> : vector<32x128xf32>
    %103 = tpu.matmul %101, %102, %cst_43 {dimension_numbers = #tpu.dot_dimension_numbers<[1], [0], [0], [1], [0, 0, 1, 1], [], []>} : vector<32x256xbf16>, vector<256x128xbf16>, vector<32x128xf32> -> vector<32x128xf32>
    %c0_44 = arith.constant 0 : index
    %c0_45 = arith.constant 0 : index
    %104 = vector.load %arg9[%c0_44, %c0_45] : memref<2x128xf32, #tpu.memory_space<vmem>>, vector<1x128xf32>
    %105 = vector.broadcast %104 : vector<1x128xf32> to vector<32x128xf32>
    %106 = arith.mulf %103, %105 : vector<32x128xf32>
    %c1_46 = arith.constant 1 : index
    %c0_47 = arith.constant 0 : index
    %107 = vector.load %arg9[%c1_46, %c0_47] : memref<2x128xf32, #tpu.memory_space<vmem>>, vector<1x128xf32>
    %108 = vector.broadcast %107 : vector<1x128xf32> to vector<32x128xf32>
    %109 = arith.addf %106, %108 : vector<32x128xf32>
    %110 = vector.shape_cast %109 : vector<32x128xf32> to vector<2x16x128xf32>
    %cst_48 = arith.constant dense<0.000000e+00> : vector<2x128xf32>
    %111 = vector.multi_reduction <add>, %110, %cst_48 [1] : vector<2x16x128xf32> to vector<2x128xf32>
    %c4_49 = arith.constant 4 : index
    %c0_50 = arith.constant 0 : index
    %112 = vector.load %arg10[%c4_49, %c0_50] : memref<5x128xf32, #tpu.memory_space<vmem>>, vector<1x128xf32>
    %c0_51 = arith.constant 0 : index
    %c0_52 = arith.constant 0 : index
    %113 = vector.load %arg10[%c0_51, %c0_52] : memref<5x128xf32, #tpu.memory_space<vmem>>, vector<1x128xf32>
    %114 = vector.shape_cast %113 : vector<1x128xf32> to vector<128xf32>
    %115 = vector.shape_cast %114 : vector<128xf32> to vector<1x128xf32>
    %116 = vector.broadcast %115 : vector<1x128xf32> to vector<2x128xf32>
    %117 = arith.mulf %111, %116 : vector<2x128xf32>
    %cst_53 = arith.constant dense<0.000000e+00> : vector<2xf32>
    %118 = vector.multi_reduction <add>, %117, %cst_53 [1] : vector<2x128xf32> to vector<2xf32>
    %119 = vector.shape_cast %118 : vector<2xf32> to vector<2x1xf32>
    %c0_54 = arith.constant 0 : index
    %c0_55 = arith.constant 0 : index
    %120 = vector.load %arg11[%c0_54, %c0_55] : memref<2x1xf32, #tpu.memory_space<vmem>>, vector<1x1xf32>
    %121 = vector.broadcast %120 : vector<1x1xf32> to vector<2x1xf32>
    %122 = arith.addf %119, %121 : vector<2x1xf32>
    %cst_56 = arith.constant 0.000000e+00 : f32
    %123 = vector.broadcast %cst_56 : f32 to vector<2x1xf32>
    %124 = arith.maximumf %122, %123 : vector<2x1xf32>
    %c2_57 = arith.constant 2 : index
    %c0_58 = arith.constant 0 : index
    %125 = vector.load %arg10[%c2_57, %c0_58] : memref<5x128xf32, #tpu.memory_space<vmem>>, vector<1x128xf32>
    %126 = vector.shape_cast %125 : vector<1x128xf32> to vector<128xf32>
    %127 = vector.shape_cast %126 : vector<128xf32> to vector<1x128xf32>
    %128 = vector.broadcast %124 : vector<2x1xf32> to vector<2x128xf32>
    %129 = vector.broadcast %127 : vector<1x128xf32> to vector<2x128xf32>
    %130 = arith.mulf %128, %129 : vector<2x128xf32>
    %131 = vector.broadcast %112 : vector<1x128xf32> to vector<2x128xf32>
    %132 = arith.addf %131, %130 : vector<2x128xf32>
    %c1_59 = arith.constant 1 : index
    %c0_60 = arith.constant 0 : index
    %133 = vector.load %arg10[%c1_59, %c0_60] : memref<5x128xf32, #tpu.memory_space<vmem>>, vector<1x128xf32>
    %134 = vector.shape_cast %133 : vector<1x128xf32> to vector<128xf32>
    %135 = vector.shape_cast %134 : vector<128xf32> to vector<1x128xf32>
    %136 = vector.broadcast %135 : vector<1x128xf32> to vector<2x128xf32>
    %137 = arith.mulf %111, %136 : vector<2x128xf32>
    %cst_61 = arith.constant dense<0.000000e+00> : vector<2xf32>
    %138 = vector.multi_reduction <add>, %137, %cst_61 [1] : vector<2x128xf32> to vector<2xf32>
    %139 = vector.shape_cast %138 : vector<2xf32> to vector<2x1xf32>
    %c1_62 = arith.constant 1 : index
    %c0_63 = arith.constant 0 : index
    %140 = vector.load %arg11[%c1_62, %c0_63] : memref<2x1xf32, #tpu.memory_space<vmem>>, vector<1x1xf32>
    %141 = vector.broadcast %140 : vector<1x1xf32> to vector<2x1xf32>
    %142 = arith.addf %139, %141 : vector<2x1xf32>
    %cst_64 = arith.constant 0.000000e+00 : f32
    %143 = vector.broadcast %cst_64 : f32 to vector<2x1xf32>
    %144 = arith.maximumf %142, %143 : vector<2x1xf32>
    %c3_65 = arith.constant 3 : index
    %c0_66 = arith.constant 0 : index
    %145 = vector.load %arg10[%c3_65, %c0_66] : memref<5x128xf32, #tpu.memory_space<vmem>>, vector<1x128xf32>
    %146 = vector.shape_cast %145 : vector<1x128xf32> to vector<128xf32>
    %147 = vector.shape_cast %146 : vector<128xf32> to vector<1x128xf32>
    %148 = vector.broadcast %144 : vector<2x1xf32> to vector<2x128xf32>
    %149 = vector.broadcast %147 : vector<1x128xf32> to vector<2x128xf32>
    %150 = arith.mulf %148, %149 : vector<2x128xf32>
    %151 = arith.addf %132, %150 : vector<2x128xf32>
    %cst_67 = arith.constant 0.000000e+00 : f32
    %cst_68 = arith.constant 1.000000e+00 : f32
    %152 = vector.broadcast %cst_67 : f32 to vector<2x128xf32>
    %153 = arith.maximumf %152, %151 : vector<2x128xf32>
    %154 = vector.broadcast %cst_68 : f32 to vector<2x128xf32>
    %155 = arith.minimumf %154, %153 : vector<2x128xf32>
    %156 = vector.shape_cast %155 : vector<2x128xf32> to vector<2x1x128xf32>
    %157 = vector.broadcast %156 : vector<2x1x128xf32> to vector<2x16x128xf32>
    %158 = arith.mulf %110, %157 : vector<2x16x128xf32>
    %159 = vector.shape_cast %158 : vector<2x16x128xf32> to vector<32x128xf32>
    %160 = arith.extf %0 : vector<32x128xbf16> to vector<32x128xf32>
    %161 = arith.addf %159, %160 : vector<32x128xf32>
    %c0_69 = arith.constant 0 : index
    %c0_70 = arith.constant 0 : index
    %162 = vector.load %arg13[%c0_69, %c0_70] : memref<32x128xf32, #tpu.memory_space<vmem>>, vector<32x128xf32>
    tpu.vector_store %arg13[%c0_69, %c0_70], %161 {strides = array<i32>} : memref<32x128xf32, #tpu.memory_space<vmem>>, vector<32x128xf32>,
    return
  }
  func.func @transform_0(%arg0: i32) -> (i32, i32) {
    %c0_i32 = arith.constant 0 : i32
    %c0_i32_0 = arith.constant 0 : i32
    return %arg0, %c0_i32 : i32, i32
  }
  func.func @transform_1(%arg0: i32) -> (i32, i32) {
    %c0_i32 = arith.constant 0 : i32
    %c0_i32_0 = arith.constant 0 : i32
    %c0_i32_1 = arith.constant 0 : i32
    return %c0_i32, %c0_i32_0 : i32, i32
  }
  func.func @transform_2(%arg0: i32) -> (i32, i32) {
    %c0_i32 = arith.constant 0 : i32
    %c0_i32_0 = arith.constant 0 : i32
    %c0_i32_1 = arith.constant 0 : i32
    return %c0_i32, %c0_i32_0 : i32, i32
  }
  func.func @transform_3(%arg0: i32) -> (i32, i32) {
    %c0_i32 = arith.constant 0 : i32
    %c0_i32_0 = arith.constant 0 : i32
    %c0_i32_1 = arith.constant 0 : i32
    return %c0_i32, %c0_i32_0 : i32, i32
  }
  func.func @transform_4(%arg0: i32) -> (i32, i32) {
    %c0_i32 = arith.constant 0 : i32
    %c0_i32_0 = arith.constant 0 : i32
    %c0_i32_1 = arith.constant 0 : i32
    return %c0_i32, %c0_i32_0 : i32, i32
  }
  func.func @transform_5(%arg0: i32) -> (i32, i32) {
    %c0_i32 = arith.constant 0 : i32
    %c0_i32_0 = arith.constant 0 : i32
    %c0_i32_1 = arith.constant 0 : i32
    return %c0_i32, %c0_i32_0 : i32, i32
  }
  func.func @transform_6(%arg0: i32) -> (i32, i32) {
    %c0_i32 = arith.constant 0 : i32
    %c0_i32_0 = arith.constant 0 : i32
    %c0_i32_1 = arith.constant 0 : i32
    return %c0_i32, %c0_i32_0 : i32, i32
  }
  func.func @transform_7(%arg0: i32) -> (i32, i32) {
    %c0_i32 = arith.constant 0 : i32
    %c0_i32_0 = arith.constant 0 : i32
    %c0_i32_1 = arith.constant 0 : i32
    return %c0_i32, %c0_i32_0 : i32, i32
  }
  func.func @transform_8(%arg0: i32) -> (i32, i32) {
    %c0_i32 = arith.constant 0 : i32
    %c0_i32_0 = arith.constant 0 : i32
    %c0_i32_1 = arith.constant 0 : i32
    return %c0_i32, %c0_i32_0 : i32, i32
  }
  func.func @transform_9(%arg0: i32) -> (i32, i32) {
    %c0_i32 = arith.constant 0 : i32
    %c0_i32_0 = arith.constant 0 : i32
    %c0_i32_1 = arith.constant 0 : i32
    return %c0_i32, %c0_i32_0 : i32, i32
  }
  func.func @transform_10(%arg0: i32) -> (i32, i32) {
    %c0_i32 = arith.constant 0 : i32
    %c0_i32_0 = arith.constant 0 : i32
    %c0_i32_1 = arith.constant 0 : i32
    return %c0_i32, %c0_i32_0 : i32, i32
  }
  func.func @transform_11(%arg0: i32) -> (i32, i32, i32) {
    %c0_i32 = arith.constant 0 : i32
    %c0_i32_0 = arith.constant 0 : i32
    %c0_i32_1 = arith.constant 0 : i32
    %c0_i32_2 = arith.constant 0 : i32
    return %c0_i32, %c0_i32_0, %c0_i32_1 : i32, i32, i32
  }
  func.func @transform_12(%arg0: i32) -> (i32, i32) {
    %c0_i32 = arith.constant 0 : i32
    %c0_i32_0 = arith.constant 0 : i32
    return %arg0, %c0_i32 : i32, i32
  }
}

</mosaic_0001>

<bundles_post_ra>
// kernel: tile.135
= control target key start
LH: loop header
LB: loop body
LE: loop exit
PB: predicated region body
PF: predicated region fallthrough
CT: control target
= control target key end

     0   :  { %s28_s0 = inlined_call_operand.vmem [shape: f32[8], index: 0, kind: input, shape index: {}]   ;;  %s29_s1 = inlined_call_operand.vmem [shape: f32[16,8], index: 1, kind: output, shape index: {}]  }
   0x1   :  { %v4_v0 = vld [vmem:[%s28_s0] ss:$0 sm:$0xff] }
   0x2   :  { %5 = vst [vmem:[%s29_s1] sm:$0xff] %v4_v0  ;;  %8 = vst [vmem:[%s29_s1 + $0x8] sm:$0xff] %v4_v0 }

// kernel: ghost_bottleneck.1
= control target key start
LH: loop header
LB: loop body
LE: loop exit
PB: predicated region body
PF: predicated region fallthrough
CT: control target
= control target key end

     0   :  { %v1277_v1 = vmov 0   ;;  %v209_v43 = vlaneseq  ;;  %s1278_s16 = smov 8   ;;  %vm943_vm2 = vcmask 1041409   ;;  %vm946_vm3 = vcmask 1041408   ;;  %s1779_s1 = inlined_call_operand.vmem [shape: bf16[128,256], index: 1, kind: input, shape index: {}]   ;;  %s1780_s3 = inlined_call_operand.vmem [shape: bf16[256,128], index: 3, kind: input, shape index: {}]   ;;  %s1781_s0 = inlined_call_operand.vmem [shape: bf16[32,128], index: 0, kind: input, shape index: {}]   ;;  %s1782_s11 = inlined_call_operand.vmem [shape: f32[2,32,1], index: 11, kind: input, shape index: {}]   ;;  %s1783_s2 = inlined_call_operand.vmem [shape: f32[2,256], index: 2, kind: input, shape index: {}]   ;;  %s1784_s4 = inlined_call_operand.vmem [shape: f32[2,128], index: 4, kind: input, shape index: {}]   ;;  %s1785_s7 = inlined_call_operand.vmem [shape: bf16[256,128], index: 7, kind: input, shape index: {}]   ;;  %s1786_s5 = inlined_call_operand.vmem [shape: f32[9,128], index: 5, kind: input, shape index: {}]   ;;  %s1787_s6 = inlined_call_operand.vmem [shape: f32[2,128], index: 6, kind: input, shape index: {}]   ;;  %s1788_s8 = inlined_call_operand.vmem [shape: f32[2,128], index: 8, kind: input, shape index: {}]   ;;  %s1789_s9 = inlined_call_operand.vmem [shape: f32[5,128], index: 9, kind: input, shape index: {}]   ;;  %s1790_s10 = inlined_call_operand.vmem [shape: f32[2,1], index: 10, kind: input, shape index: {}]   ;;  %s1791_s12 = inlined_call_operand.vmem [shape: f32[32,128], index: 12, kind: output, shape index: {}]  }
   0x1   :  { %v1217_v0 = vld [vmem:[%s1779_s1 + $0x4] ss:$8 sps:$4 sm:$0xff]   ;;  %186 = vmatprep.mubr.bf16.mxu0 %v1277_v1  ;;  %1215 = vset.pattern.permute.xlu0 %v1277_v1  ;;  %v1219_v2 = vld [vmem:[%s1779_s1] ss:$8 sps:$4 sm:$0xff]   ;;  %v1220_v3 = vld [vmem:[%s1779_s1 + $0x14] ss:$8 sps:$4 sm:$0xff]  }
   0x2   :  { %1216 = vset.pattern.permute.xlu1 %v1277_v1  ;;  %154 = vmatprep.subr.bf16.mxu0 %v1217_v0  ;;  %v1222_v4 = vld [vmem:[%s1779_s1 + $0x10] ss:$8 sps:$4 sm:$0xff]   ;;  %v1223_v5 = vld [vmem:[%s1779_s1 + $0x24] ss:$8 sps:$4 sm:$0xff]   ;;  %v1225_v6 = vld [vmem:[%s1779_s1 + $0x20] ss:$8 sps:$4 sm:$0xff]  }
   0x3   :  { %155 = vmatpush1.bf16.msra.mxu0 %v1219_v2  ;;  %v1226_v7 = vld [vmem:[%s1779_s1 + $0x34] ss:$8 sps:$4 sm:$0xff]   ;;  %v1228_v8 = vld [vmem:[%s1779_s1 + $0x30] ss:$8 sps:$4 sm:$0xff]   ;;  %v1229_v9 = vld [vmem:[%s1779_s1 + $0x44] ss:$8 sps:$4 sm:$0xff]  }
   0x4   :  { %156 = vmatprep.subr.bf16.mxu0 %v1220_v3  ;;  %v1243_v10 = vld [vmem:[%s1780_s3 + $0x40] sm:$0xff]   ;;  %v1232_v13 = vld [vmem:[%s1779_s1 + $0x54] ss:$8 sps:$4 sm:$0xff]   ;;  %v1245_v14 = vld [vmem:[%s1780_s3 + $0x48] sm:$0xff]   ;;  %v1478_v44 = vshrl.u32 %v209_v43, 7 }
   0x5   :  { %v1231_v11 = vld [vmem:[%s1779_s1 + $0x40] ss:$8 sps:$4 sm:$0xff]   ;;  %1139 = vmatprep.subr.bf16.mxu1 %v1243_v10  ;;  %v1247_v16 = vld [vmem:[%s1780_s3 + $0x50] sm:$0xff]   ;;  %v1235_v18 = vld [vmem:[%s1779_s1 + $0x64] ss:$8 sps:$4 sm:$0xff]  }
   0x6   :  { %v1244_v12 = vld [vmem:[%s1780_s3] sm:$0xff]   ;;  %v1246_v15 = vld [vmem:[%s1780_s3 + $0x8] sm:$0xff]   ;;  %v1234_v17 = vld [vmem:[%s1779_s1 + $0x50] ss:$8 sps:$4 sm:$0xff]   ;;  %v1481_v45 = vsub.s32 0, %v1478_v44  ;;  %v215_v47 = vsub.s32 1, %v1478_v44 }
   0x7   :  { %157 = vmatpush1.bf16.msra.mxu0 %v1222_v4  ;;  %1140 = vmatpush3.bf16.msra.mxu1 %v1244_v12  ;;  %v1248_v19 = vld [vmem:[%s1780_s3 + $0x10] sm:$0xff]   ;;  %v1249_v20 = vld [vmem:[%s1780_s3 + $0x58] sm:$0xff]   ;;  %v1237_v21 = vld [vmem:[%s1779_s1 + $0x60] ss:$8 sps:$4 sm:$0xff]   ;;  %vm507_vm0 = vcmp.lt.s32.totalorder %v1478_v44, 7  ;;  %vm474_vm1 = vcmp.lt.s32.totalorder %v1478_v44, 1 }
   0x8   :  { %158 = vmatprep.subr.bf16.mxu0 %v1223_v5  ;;  %1141 = vmatprep.subr.bf16.mxu1 %v1245_v14  ;;  %v1250_v22 = vld [vmem:[%s1780_s3 + $0x18] sm:$0xff]   ;;  %v1251_v24 = vld [vmem:[%s1780_s3 + $0x60] sm:$0xff]   ;;  %v1433_v28 = vld [vmem:[%s1781_s0 + $0x8] sm:$0xff]  }
   0x9   :  { %v1238_v23 = vld [vmem:[%s1779_s1 + $0x74] ss:$8 sps:$4 sm:$0xff]   ;;  %v1240_v25 = vld [vmem:[%s1779_s1 + $0x70] ss:$8 sps:$4 sm:$0xff]   ;;  %v1424_v26 = vld [vmem:[%s1781_s0] sm:$0xff]  }
   0xa   :  { %v1252_v27 = vld [vmem:[%s1780_s3 + $0x20] sm:$0xff]   ;;  %v1253_v29 = vld [vmem:[%s1780_s3 + $0x68] sm:$0xff]   ;;  %v1255_v31 = vld [vmem:[%s1780_s3 + $0x70] sm:$0xff]  }
   0xb   :  { %159 = vmatpush1.bf16.msra.mxu0 %v1225_v6  ;;  %1142 = vmatpush3.bf16.msra.mxu1 %v1246_v15  ;;  %v1254_v30 = vld [vmem:[%s1780_s3 + $0x28] sm:$0xff]   ;;  %v1256_v32 = vld [vmem:[%s1780_s3 + $0x30] sm:$0xff]   ;;  %v1257_v33 = vld [vmem:[%s1780_s3 + $0x78] sm:$0xff]  }
   0xc   :  { %160 = vmatprep.subr.bf16.mxu0 %v1226_v7  ;;  %1143 = vmatprep.subr.bf16.mxu1 %v1247_v16  ;;  %v1258_v34 = vld [vmem:[%s1780_s3 + $0x38] sm:$0xff]   ;;  %v461_v35 = vld [vmem:[%s1782_s11 + $0x10] sm:$0xff]  ;;  %v459_v36 = vld [vmem:[%s1782_s11] sm:$0xff] }
   0xd   :  { %491 = vperm.xlu0 %1215, %v461_v35   ;;  %v462_v37 = vld [vmem:[%s1782_s11 + $0x18] sm:$0xff]  ;;  %481 = vperm.xlu1 %1216, %v459_v36   ;;  %v460_v38 = vld [vmem:[%s1782_s11 + $0x8] sm:$0xff]  ;;  %v1101_v39 = vld [vmem:[%s1782_s11 + $0x30] sm:$0xff] }
   0xe   :  { %v1102_v40 = vld [vmem:[%s1782_s11 + $0x38] sm:$0xff]  ;;  %v1099_v41 = vld [vmem:[%s1782_s11 + $0x20] sm:$0xff]  ;;  %v1100_v42 = vld [vmem:[%s1782_s11 + $0x28] sm:$0xff] }
   0xf   :  { %161 = vmatpush1.bf16.msra.mxu0 %v1228_v8  ;;  %1144 = vmatpush3.bf16.msra.mxu1 %v1248_v19  ;;  %v207_v46 = vld [vmem:[%s1783_s2] ss:$2 sm:$0x3]  ;;  %v1080_v48 = vld [vmem:[%s1783_s2 + $0x1] ss:$2 sm:$0x3] }
  0x10   :  { %162 = vmatprep.subr.bf16.mxu0 %v1229_v9  ;;  %1145 = vmatprep.subr.bf16.mxu1 %v1249_v20  ;;  %v212_v49 = vrot.slane %v207_v46, %v1481_v45  ;;  %v216_v50 = vrot.slane %v207_v46, %v215_v47  ;;  %v233_v51 = vrot.slane %v1080_v48, %v1481_v45 }
  0x11   :  { %496 = vperm.xlu0 %1215, %v462_v37   ;;  %486 = vperm.xlu1 %1216, %v460_v38   ;;  %v237_v53 = vrot.slane %v1080_v48, %v215_v47 }
  0x13   :  { %163 = vmatpush1.bf16.msra.mxu0 %v1231_v11  ;;  %1146 = vmatpush3.bf16.msra.mxu1 %v1250_v22 }
  0x14   :  { %164 = vmatprep.subr.bf16.mxu0 %v1232_v13  ;;  %1147 = vmatprep.subr.bf16.mxu1 %v1251_v24 }
  0x15   :  { %524 = vperm.xlu0 %1215, %v1101_v39   ;;  %529 = vperm.xlu1 %1216, %v1102_v40  }
  0x17   :  { %165 = vmatpush1.bf16.msra.mxu0 %v1234_v17  ;;  %1148 = vmatpush3.bf16.msra.mxu1 %v1252_v27 }
  0x18   :  { %166 = vmatprep.subr.bf16.mxu0 %v1235_v18  ;;  %1149 = vmatprep.subr.bf16.mxu1 %v1253_v29 }
  0x19   :  { %514 = vperm.xlu0 %1215, %v1099_v41   ;;  %519 = vperm.xlu1 %1216, %v1100_v42  }
  0x1b   :  { %167 = vmatpush1.bf16.msra.mxu0 %v1237_v21  ;;  %1150 = vmatpush3.bf16.msra.mxu1 %v1254_v30  ;;  %v1097_v30 = vld [vmem:[%s1784_s4] ss:$0 sm:$0xff] }
  0x1c   :  { %168 = vmatprep.subr.bf16.mxu0 %v1238_v23  ;;  %1151 = vmatprep.subr.bf16.mxu1 %v1255_v31 }
  0x1f   :  { %169 = vmatpush1.bf16.msra.mxu0 %v1240_v25  ;;  %1152 = vmatpush3.bf16.msra.mxu1 %v1256_v32 }
  0x20   :  { %1153 = vmatprep.subr.bf16.mxu1 %v1257_v33 }
  0x22   :  { %187 = vmatmul.mubr.bf16.vlgmr.msra.gmra.mrb[0].mxu0 %v1424_v26 }
  0x23   :  { %196 = vmatprep.mubr.bf16.mxu0 %v1277_v1  ;;  %1154 = vmatpush3.bf16.msra.mxu1 %v1258_v34  ;;  %v1098_v34 = vld [vmem:[%s1784_s4 + $0x1] ss:$0 sm:$0xff]  ;;  %s1279_s4 = smov 120  }
  0x2a   :  { %197 = vmatmul.mubr.bf16.gmra.mrb[4].mxu0 %v1433_v28 }
  0x8c   :  { %v1492_v25 = vpop.permute.xlu0 %491 }
  0x90   :  { %v1497_v31 = vpop.permute.xlu0 %496 }
  0x94   :  { %v1502_v40 = vpop.permute.xlu0 %524 }
  0xf5   :  { %v188_v52 = vpop.f32.mrb[0].mxu0 }
  0xf6   :  { %v219_v54 = vmul.f32 %v212_v49, %v188_v52  ;;  %v190_v55 = vpop.f32.mrb[1].mxu0 }
  0xf7   :  { %v220_v56 = vmul.f32 %v216_v50, %v190_v55  ;;  %v192_v57 = vpop.f32.mrb[2].mxu0 }
  0xf8   :  { %v240_v58 = vadd.f32 %v233_v51, %v219_v54  ;;  %v221_v59 = vmul.f32 %v212_v49, %v192_v57  ;;  %v194_v60 = vpop.f32.mrb[3].mxu0 }
  0xf9   :  { %v222_v61 = vmul.f32 %v216_v50, %v194_v60  ;;  %v241_v62 = vadd.f32 %v237_v53, %v220_v56 }
  0xfa   :  { %v242_v63 = vadd.f32 %v233_v51, %v221_v59  ;;  %v248_v1 = vmax.f32 %v240_v58, 0.0  ;;  %v515_v59 = vpop.permute.xlu0 %514 }
  0xfb   :  { %v243_v0 = vadd.f32 %v237_v53, %v222_v61  ;;  %v249_v4 = vmax.f32 %v241_v62, 0.0 }
  0xfc   :  { %v250_v2 = vmax.f32 %v242_v63, 0.0 }
  0xfd   :  { %v198_v3 = vpop.f32.mrb[4].mxu0  ;;  %v251_v5 = vmax.f32 %v243_v0, 0.0 }
  0xfe   :  { %v223_v6 = vmul.f32 %v212_v49, %v198_v3  ;;  %v200_v7 = vpop.f32.mrb[5].mxu0  ;;  %v256_v8 = vpack.c.bf16 %v250_v2, %v248_v1 }
  0xff   :  { %v224_v9 = vmul.f32 %v216_v50, %v200_v7  ;;  %v202_v10 = vpop.f32.mrb[6].mxu0  ;;  %v257_v11 = vpack.c.bf16 %v251_v5, %v249_v4 }
 0x100   :  { %v244_v12 = vadd.f32 %v233_v51, %v223_v6  ;;  %v225_v13 = vmul.f32 %v212_v49, %v202_v10  ;;  %v204_v14 = vpop.f32.mrb[7].mxu0 }
 0x101   :  { %v245_v15 = vadd.f32 %v237_v53, %v224_v9  ;;  %v226_v16 = vmul.f32 %v216_v50, %v204_v14  ;;  %420 = vmatprep.mubr.bf16.mxu1 %v257_v11  ;;  %v1510_v50 = vpop.permute.xlu1 %481 }
 0x102   :  { %v252_v17 = vmax.f32 %v244_v12, 0.0  ;;  %v246_v18 = vadd.f32 %v233_v51, %v225_v13  ;;  %421 = vmatmul.mubr.bf16.vlgmr.msra.gmra.mrb[0].mxu1 %v256_v8  ;;  %v1259_v8 = vld [vmem:[%s1785_s7 + $0x40] sm:$0xff]  }
 0x103   :  { %v253_v19 = vmax.f32 %v245_v15, 0.0  ;;  %v247_v20 = vadd.f32 %v237_v53, %v226_v16  ;;  %1195 = vmatprep.subr.bf16.mxu1 %v1259_v8  ;;  %v1260_v13 = vld [vmem:[%s1785_s7] sm:$0xff]   ;;  %1167 = vmatprep.subr.bf16.mxu0 %v1259_v8 }
 0x104   :  { %v254_v21 = vmax.f32 %v246_v18, 0.0  ;;  %1203 = vmatpush3.bf16.msra.mxu1 %v1260_v13  ;;  %v1261_v18 = vld [vmem:[%s1785_s7 + $0x48] sm:$0xff]   ;;  %1168 = vmatpush3.bf16.msra.mxu0 %v1260_v13  ;;  %v1107_v8 = vld [vmem:[%s1786_s5 + $0x4] ss:$0 sm:$0xff] }
 0x105   :  { %v255_v22 = vmax.f32 %v247_v20, 0.0  ;;  %v487_v3 = vpop.permute.xlu1 %486  ;;  %1196 = vmatprep.subr.bf16.mxu1 %v1261_v18  ;;  %1169 = vmatprep.subr.bf16.mxu0 %v1261_v18 }
 0x106   :  { %v258_v23 = vpack.c.bf16 %v254_v21, %v252_v17  ;;  %v1263_v21 = vld [vmem:[%s1785_s7 + $0x50] sm:$0xff]  }
 0x107   :  { %v259_v24 = vpack.c.bf16 %v255_v22, %v253_v19  ;;  %v1262_v19 = vld [vmem:[%s1785_s7 + $0x8] sm:$0xff]  }
 0x108   :  { %1204 = vmatpush3.bf16.msra.mxu1 %v1262_v19  ;;  %1170 = vmatpush3.bf16.msra.mxu0 %v1262_v19 }
 0x109   :  { %428 = vmatprep.mubr.bf16.mxu1 %v259_v24  ;;  %1197 = vmatprep.subr.bf16.mxu1 %v1263_v21  ;;  %v1265_v24 = vld [vmem:[%s1785_s7 + $0x58] sm:$0xff]  }
 0x10a   :  { %429 = vmatmul.mubr.bf16.gmra.mrb[4].mxu1 %v258_v23  ;;  %v1264_v23 = vld [vmem:[%s1785_s7 + $0x10] sm:$0xff]   ;;  %1171 = vmatprep.subr.bf16.mxu0 %v1263_v21 }
 0x10c   :  { %1205 = vmatpush3.bf16.msra.mxu1 %v1264_v23  ;;  %1172 = vmatpush3.bf16.msra.mxu0 %v1264_v23 }
 0x10d   :  { %1198 = vmatprep.subr.bf16.mxu1 %v1265_v24  ;;  %1173 = vmatprep.subr.bf16.mxu0 %v1265_v24 }
 0x1d5   :  { %v1155_v27 = vpop.f32.mrb[0].mxu1 }
 0x1d6   :  { %v1156_v29 = vpop.f32.mrb[1].mxu1 }
 0x1d7   :  { %v1157_v32 = vadd.f32 %v1156_v29, %v1155_v27  ;;  %v1158_v33 = vpop.f32.mrb[2].mxu1  ;;  %v530_v29 = vpop.permute.xlu1 %529 }
 0x1d8   :  { %v1159_v35 = vpop.f32.mrb[3].mxu1 }
 0x1d9   :  { %v442_v36 = vmul.f32 %v1157_v32, %v1097_v30  ;;  %v1160_v37 = vadd.f32 %v1159_v35, %v1158_v33  ;;  %v1268_v33 = vld [vmem:[%s1785_s7 + $0x20] sm:$0xff]  }
 0x1db   :  { %v451_v38 = vadd.f32 %v1098_v34, %v442_v36  ;;  %v443_v39 = vmul.f32 %v1160_v37, %v1097_v30  ;;  %v520_v35 = vpop.permute.xlu1 %519  ;;  %v1271_v37 = vld [vmem:[%s1785_s7 + $0x70] sm:$0xff]  }
 0x1dd   :  { %v1504_v41 = vmax.f32 %v451_v38, 0.0  ;;  %v452_v42 = vadd.f32 %v1098_v34, %v443_v39  ;;  %v1161_v43 = vpop.f32.mrb[4].mxu1  ;;  %v1272_v39 = vld [vmem:[%s1785_s7 + $0x30] sm:$0xff]  }
 0x1de   :  { %v1162_v46 = vpop.f32.mrb[5].mxu1 }
 0x1df   :  { %v1506_v47 = vmax.f32 %v452_v42, 0.0  ;;  %v1163_v48 = vadd.f32 %v1162_v46, %v1161_v43  ;;  %587 = vrot.lane.b32.xlu0 %v1504_v41, %s1278_s16  ;;  %v1164_v49 = vpop.f32.mrb[6].mxu1  ;;  %v503_v51 = vrot.slane %v1504_v41, 1  ;;  %v468_v52 = vrot.slane %v1504_v41, 7  ;;  %v1273_v43 = vld [vmem:[%s1785_s7 + $0x78] sm:$0xff]  }
 0x1e0   :  { %v1165_v53 = vpop.f32.mrb[7].mxu1 }
 0x1e1   :  { %v504_v54 = vrot.slane %v1506_v47, 1  ;;  %v469_v55 = vrot.slane %v1506_v47, 7  ;;  %v444_v56 = vmul.f32 %v1163_v48, %v1097_v30  ;;  %v1166_v57 = vadd.f32 %v1165_v53, %v1164_v49  ;;  %589 = vrot.lane.b32.xlu1 %v1506_v47, %s1278_s16  ;;  %v1104_v53 = vld [vmem:[%s1786_s5 + $0x1] ss:$0 sm:$0xff] }
 0x1e2   :  { %v719_v58 = vpack.c.bf16 %v1506_v47, %v1504_v41 }
 0x1e3   :  { %v510_v60 = vsel %vm507_vm0, %v503_v51, %v504_v54  ;;  %v477_v61 = vsel %vm474_vm1, %v468_v52, %v469_v55  ;;  %v453_v62 = vadd.f32 %v1098_v34, %v444_v56  ;;  %v445_v63 = vmul.f32 %v1166_v57, %v1097_v30  ;;  %621 = vrot.lane.b32.xlu0 %v1504_v41, %s1279_s4  ;;  %v1267_v30 = vld [vmem:[%s1785_s7 + $0x60] sm:$0xff]  }
 0x1e4   :  { %v1528_v0 = vmul.f32 %v515_v59, %v510_v60  ;;  %v1534_v4 = vmul.f32 %v487_v3, %v477_v61  ;;  %v1105_v57 = vld [vmem:[%s1786_s5 + $0x2] ss:$0 sm:$0xff] }
 0x1e5   :  { %v1530_v1 = vmax.f32 %v453_v62, 0.0  ;;  %v454_v2 = vadd.f32 %v1098_v34, %v445_v63  ;;  %623 = vrot.lane.b32.xlu1 %v1506_v47, %s1279_s4  ;;  %v1270_v34 = vld [vmem:[%s1785_s7 + $0x28] sm:$0xff]   ;;  %v1106_v63 = vld [vmem:[%s1786_s5 + $0x3] ss:$0 sm:$0xff] }
 0x1e6   :  { %v559_v59 = vmul.f32 %v1104_v53, %v1534_v4 }
 0x1e7   :  { %v1536_v5 = vmax.f32 %v454_v2, 0.0  ;;  %v505_v6 = vrot.slane %v1530_v1, 1  ;;  %642 = vrot.lane.b32.xlu0 %v1528_v0, %s1278_s16  ;;  %v470_v7 = vrot.slane %v1530_v1, 7 }
 0x1e9   :  { %v509_v9 = vsel %vm507_vm0, %v504_v54, %v505_v6  ;;  %538 = vrot.lane.b32.xlu1 %v1534_v4, %s1278_s16  ;;  %v476_v10 = vsel %vm474_vm1, %v469_v55, %v470_v7  ;;  %v471_v11 = vrot.slane %v1536_v5, 7  ;;  %v506_v12 = vrot.slane %v1536_v5, 1 }
 0x1ea   :  { %v720_v20 = vpack.c.bf16 %v1536_v5, %v1530_v1  ;;  %v1584_v22 = vmul.f32 %v1492_v25, %v476_v10  ;;  %v1266_v25 = vld [vmem:[%s1785_s7 + $0x18] sm:$0xff]   ;;  %v1625_v36 = vmul.f32 %v520_v35, %v509_v9  ;;  %v614_v10 = vmul.f32 %v1107_v8, %v1506_v47 }
 0x1eb   :  { %591 = vrot.lane.b32.xlu0 %v1530_v1, %s1278_s16  ;;  %v475_v14 = vsel %vm474_vm1, %v470_v7, %v471_v11  ;;  %v478_v15 = vsel %vm474_vm1, %v471_v11, %v468_v52  ;;  %v508_v16 = vsel %vm507_vm0, %v505_v6, %v506_v12  ;;  %v511_v17 = vsel %vm507_vm0, %v506_v12, %v503_v51  ;;  %v1103_v52 = vld [vmem:[%s1786_s5] ss:$0 sm:$0xff] }
 0x1ec   :  { %v1602_v27 = vmul.f32 %v1497_v31, %v475_v14  ;;  %1206 = vmatpush3.bf16.msra.mxu1 %v1266_v25  ;;  %v1610_v32 = vmul.f32 %v1510_v50, %v478_v15  ;;  %1174 = vmatpush3.bf16.msra.mxu0 %v1266_v25  ;;  %v1269_v31 = vld [vmem:[%s1785_s7 + $0x68] sm:$0xff]   ;;  %v1635_v38 = vmul.f32 %v1502_v40, %v508_v16  ;;  %v1274_v40 = vld [vmem:[%s1785_s7 + $0x38] sm:$0xff]  }
 0x1ed   :  { %568 = vrot.lane.b32.xlu1 %v1534_v4, %s1279_s4  ;;  %1199 = vmatprep.subr.bf16.mxu1 %v1267_v30  ;;  %v1642_v42 = vmul.f32 %v530_v29, %v511_v17  ;;  %v560_v14 = vmul.f32 %v1104_v53, %v1584_v22 }
 0x1ee   :  { %1175 = vmatprep.subr.bf16.mxu0 %v1267_v30  ;;  %v561_v29 = vmul.f32 %v1104_v53, %v1602_v27  ;;  %v558_v35 = vmul.f32 %v1104_v53, %v1610_v32 }
 0x1ef   :  { %625 = vrot.lane.b32.xlu0 %v1530_v1, %s1279_s4 }
 0x1f0   :  { %1207 = vmatpush3.bf16.msra.mxu1 %v1268_v33  ;;  %1176 = vmatpush3.bf16.msra.mxu0 %v1268_v33  ;;  %v615_v33 = vmul.f32 %v1107_v8, %v1530_v1  ;;  %v1131_v1 = vld [vmem:[%s1788_s8 + $0x1] ss:$0 sm:$0xff] }
 0x1f1   :  { %593 = vrot.lane.b32.xlu1 %v1536_v5, %s1278_s16  ;;  %1200 = vmatprep.subr.bf16.mxu1 %v1269_v31 }
 0x1f2   :  { %1177 = vmatprep.subr.bf16.mxu0 %v1269_v31 }
 0x1f3   :  { %540 = vrot.lane.b32.xlu0 %v1584_v22, %s1278_s16 }
 0x1f4   :  { %1208 = vmatpush3.bf16.msra.mxu1 %v1270_v34  ;;  %1178 = vmatpush3.bf16.msra.mxu0 %v1270_v34  ;;  %v1108_v34 = vld [vmem:[%s1786_s5 + $0x5] ss:$0 sm:$0xff] }
 0x1f5   :  { %627 = vrot.lane.b32.xlu1 %v1536_v5, %s1279_s4  ;;  %1201 = vmatprep.subr.bf16.mxu1 %v1271_v37 }
 0x1f6   :  { %1179 = vmatprep.subr.bf16.mxu0 %v1271_v37 }
 0x1f7   :  { %570 = vrot.lane.b32.xlu0 %v1584_v22, %s1279_s4 }
 0x1f8   :  { %1209 = vmatpush3.bf16.msra.mxu1 %v1272_v39  ;;  %1180 = vmatpush3.bf16.msra.mxu0 %v1272_v39 }
 0x1f9   :  { %542 = vrot.lane.b32.xlu1 %v1602_v27, %s1278_s16  ;;  %1202 = vmatprep.subr.bf16.mxu1 %v1273_v43 }
 0x1fa   :  { %1181 = vmatprep.subr.bf16.mxu0 %v1273_v43 }
 0x1fb   :  { %536 = vrot.lane.b32.xlu0 %v1610_v32, %s1278_s16 }
 0x1fc   :  { %1210 = vmatpush3.bf16.msra.mxu1 %v1274_v40  ;;  %1182 = vmatpush3.bf16.msra.mxu0 %v1274_v40 }
 0x1fd   :  { %572 = vrot.lane.b32.xlu1 %v1602_v27, %s1279_s4 }
 0x1ff   :  { %566 = vrot.lane.b32.xlu0 %v1610_v32, %s1279_s4 }
 0x201   :  { %644 = vrot.lane.b32.xlu1 %v1625_v36, %s1278_s16 }
 0x203   :  { %646 = vrot.lane.b32.xlu0 %v1635_v38, %s1278_s16 }
 0x205   :  { %648 = vrot.lane.b32.xlu1 %v1642_v42, %s1278_s16 }
 0x207   :  { %680 = vrot.lane.b32.xlu0 %v1635_v38, %s1279_s4 }
 0x209   :  { %682 = vrot.lane.b32.xlu1 %v1642_v42, %s1279_s4 }
 0x20b   :  { %676 = vrot.lane.b32.xlu0 %v1528_v0, %s1279_s4 }
 0x20d   :  { %678 = vrot.lane.b32.xlu1 %v1625_v36, %s1279_s4 }
 0x251   :  { %v588_v46 = vpop.permute.xlu0 %587 }
 0x252   :  { %v600_v27 = vmul.f32 %v1106_v63, %v588_v46  ;;  %v1110_v46 = vld [vmem:[%s1786_s5 + $0x7] ss:$0 sm:$0xff] }
 0x253   :  { %v590_v48 = vpop.permute.xlu1 %589 }
 0x254   :  { %v601_v3 = vmul.f32 %v1106_v63, %v590_v48 }
 0x255   :  { %v1660_v49 = vpop.permute.xlu0 %621 }
 0x257   :  { %v624_v50 = vpop.permute.xlu1 %623 }
 0x258   :  { %v635_v43 = vmul.f32 %v1108_v34, %v624_v50  ;;  %v613_v50 = vmul.f32 %v1107_v8, %v1504_v41 }
 0x259   :  { %v1662_v51 = vpop.permute.xlu0 %642 }
 0x25b   :  { %v539_v54 = vpop.permute.xlu1 %538 }
 0x25c   :  { %v550_v55 = vmul.f32 %v1103_v52, %v539_v54 }
 0x25d   :  { %v592_v56 = vpop.permute.xlu0 %591 }
 0x25e   :  { %v563_v61 = vadd.f32 %v559_v59, %v550_v55  ;;  %v602_v19 = vmul.f32 %v1106_v63, %v592_v56 }
 0x25f   :  { %v569_v60 = vpop.permute.xlu1 %568 }
 0x260   :  { %v580_v62 = vmul.f32 %v1105_v57, %v569_v60 }
 0x261   :  { %v626_v2 = vpop.permute.xlu0 %625 }
 0x262   :  { %v584_v6 = vadd.f32 %v580_v62, %v563_v61  ;;  %v636_v59 = vmul.f32 %v1108_v34, %v626_v2  ;;  %v616_v61 = vmul.f32 %v1107_v8, %v1536_v5  ;;  %v1111_v8 = vld [vmem:[%s1786_s5 + $0x8] ss:$0 sm:$0xff] }
 0x263   :  { %v594_v7 = vpop.permute.xlu1 %593 }
 0x264   :  { %v605_v9 = vadd.f32 %v601_v3, %v584_v6  ;;  %v603_v48 = vmul.f32 %v1106_v63, %v594_v7 }
 0x265   :  { %v541_v11 = vpop.permute.xlu0 %540 }
 0x266   :  { %v551_v4 = vmul.f32 %v1103_v52, %v541_v11  ;;  %v618_v12 = vadd.f32 %v614_v10, %v605_v9  ;;  %v669_v11 = vmul.f32 %v1110_v46, %v1625_v36 }
 0x267   :  { %v628_v13 = vpop.permute.xlu1 %627 }
 0x268   :  { %v564_v16 = vadd.f32 %v560_v14, %v551_v4  ;;  %v639_v32 = vadd.f32 %v635_v43, %v618_v12  ;;  %v637_v6 = vmul.f32 %v1108_v34, %v628_v13  ;;  %v634_v4 = vmul.f32 %v1108_v34, %v1660_v49 }
 0x269   :  { %v571_v15 = vpop.permute.xlu0 %570  ;;  %v670_v12 = vmul.f32 %v1110_v46, %v1635_v38  ;;  %v668_v38 = vmul.f32 %v1110_v46, %v1528_v0 }
 0x26a   :  { %v581_v17 = vmul.f32 %v1105_v57, %v571_v15 }
 0x26b   :  { %v543_v18 = vpop.permute.xlu1 %542 }
 0x26c   :  { %v585_v21 = vadd.f32 %v581_v17, %v564_v16  ;;  %v552_v23 = vmul.f32 %v1103_v52, %v543_v18 }
 0x26d   :  { %v537_v24 = vpop.permute.xlu0 %536 }
 0x26e   :  { %v606_v25 = vadd.f32 %v602_v19, %v585_v21  ;;  %v549_v30 = vmul.f32 %v1103_v52, %v537_v24  ;;  %v565_v22 = vadd.f32 %v561_v29, %v552_v23  ;;  %v1109_v52 = vld [vmem:[%s1786_s5 + $0x6] ss:$0 sm:$0xff]  ;;  %v671_v21 = vmul.f32 %v1110_v46, %v1642_v42  ;;  %v1112_v29 = vld [vmem:[%s1787_s6] ss:$0 sm:$0xff]  ;;  %v1113_v42 = vld [vmem:[%s1787_s6 + $0x1] ss:$0 sm:$0xff] }
 0x26f   :  { %v573_v31 = vpop.permute.xlu1 %572  ;;  %v655_v18 = vmul.f32 %v1109_v52, %v1662_v51  ;;  %v1130_v46 = vld [vmem:[%s1788_s8] ss:$0 sm:$0xff] }
 0x270   :  { %v582_v37 = vmul.f32 %v1105_v57, %v573_v31  ;;  %v619_v39 = vadd.f32 %v615_v33, %v606_v25  ;;  %v562_v54 = vadd.f32 %v558_v35, %v549_v30 }
 0x271   :  { %v567_v40 = vpop.permute.xlu0 %566 }
 0x272   :  { %v586_v55 = vadd.f32 %v582_v37, %v565_v22  ;;  %v579_v56 = vmul.f32 %v1105_v57, %v567_v40  ;;  %v640_v9 = vadd.f32 %v636_v59, %v619_v39 }
 0x273   :  { %v645_v60 = vpop.permute.xlu1 %644 }
 0x274   :  { %v607_v62 = vadd.f32 %v603_v48, %v586_v55  ;;  %v583_v3 = vadd.f32 %v579_v56, %v562_v54  ;;  %v656_v53 = vmul.f32 %v1109_v52, %v645_v60 }
 0x275   :  { %v647_v7 = vpop.permute.xlu0 %646 }
 0x276   :  { %v604_v57 = vadd.f32 %v600_v27, %v583_v3  ;;  %v660_v63 = vadd.f32 %v656_v53, %v639_v32  ;;  %v657_v10 = vmul.f32 %v1109_v52, %v647_v7  ;;  %v620_v2 = vadd.f32 %v616_v61, %v607_v62 }
 0x277   :  { %v649_v14 = vpop.permute.xlu1 %648 }
 0x278   :  { %v617_v13 = vadd.f32 %v613_v50, %v604_v57  ;;  %v661_v15 = vadd.f32 %v657_v10, %v640_v9  ;;  %v641_v16 = vadd.f32 %v637_v6, %v620_v2  ;;  %v658_v17 = vmul.f32 %v1109_v52, %v649_v14 }
 0x279   :  { %v681_v19 = vpop.permute.xlu0 %680  ;;  %v673_v23 = vadd.f32 %v669_v11, %v660_v63 }
 0x27a   :  { %v662_v36 = vadd.f32 %v658_v17, %v641_v16  ;;  %v674_v24 = vadd.f32 %v670_v12, %v661_v15  ;;  %v691_v49 = vmul.f32 %v1111_v8, %v681_v19  ;;  %v638_v25 = vadd.f32 %v634_v4, %v617_v13 }
 0x27b   :  { %v683_v30 = vpop.permute.xlu1 %682 }
 0x27c   :  { %v695_v33 = vadd.f32 %v691_v49, %v674_v24  ;;  %v675_v31 = vadd.f32 %v671_v21, %v662_v36  ;;  %v692_v34 = vmul.f32 %v1111_v8, %v683_v30  ;;  %v659_v22 = vadd.f32 %v655_v18, %v638_v25  ;;  %v1136_v30 = vld [vmem:[%s1789_s9 + $0x1] ss:$0 sm:$0xff] }
 0x27d   :  { %v677_v51 = vpop.permute.xlu0 %676 }
 0x27e   :  { %v704_v35 = vmul.f32 %v1112_v29, %v695_v33  ;;  %v696_v37 = vadd.f32 %v692_v34, %v675_v31  ;;  %v672_v39 = vadd.f32 %v668_v38, %v659_v22  ;;  %v689_v43 = vmul.f32 %v1111_v8, %v677_v51  ;;  %v1132_v33 = vld [vmem:[%s1789_s9] ss:$0 sm:$0xff] }
 0x27f   :  { %v679_v40 = vpop.permute.xlu1 %678 }
 0x280   :  { %v705_v0 = vmul.f32 %v1112_v29, %v696_v37  ;;  %v693_v48 = vadd.f32 %v689_v43, %v672_v39  ;;  %v690_v54 = vmul.f32 %v1111_v8, %v679_v40  ;;  %v713_v55 = vadd.f32 %v1113_v42, %v704_v35 }
 0x282   :  { %v702_v56 = vmul.f32 %v1112_v29, %v693_v48  ;;  %v694_v27 = vadd.f32 %v690_v54, %v673_v23  ;;  %v714_v52 = vadd.f32 %v1113_v42, %v705_v0  ;;  %v717_v60 = vmax.f32 %v713_v55, 0.0 }
 0x284   :  { %v703_v59 = vmul.f32 %v1112_v29, %v694_v27  ;;  %v718_v61 = vmax.f32 %v714_v52, 0.0  ;;  %v711_v62 = vadd.f32 %v1113_v42, %v702_v56  ;;  %v1137_v56 = vld [vmem:[%s1790_s10 + $0x1] ss:$0 sm:$0xff]  ;;  %v1133_v27 = vld [vmem:[%s1790_s10] ss:$0 sm:$0xff] }
 0x286   :  { %v722_v3 = vpack.c.bf16 %v718_v61, %v717_v60  ;;  %v712_v32 = vadd.f32 %v1113_v42, %v703_v59  ;;  %v715_v53 = vmax.f32 %v711_v62, 0.0 }
 0x288   :  { %891 = vmatprep.mubr.bf16.mxu1 %v722_v3  ;;  %v716_v6 = vmax.f32 %v712_v32, 0.0  ;;  %v1134_v32 = vld [vmem:[%s1789_s9 + $0x2] ss:$0 sm:$0xff] }
 0x289   :  { %892 = vmatmul.mubr.bf16.vlgmr.msra.gmra.mrb[8].mxu1 %v720_v20 }
 0x28a   :  { %v721_v50 = vpack.c.bf16 %v716_v6, %v715_v53  ;;  %v1280_v53 = vmov 1966171168  }
 0x28b   :  { %v1011_v6 = vunpack.c.l.s4 %v1280_v53 }
 0x28c   :  { %883 = vmatprep.mubr.bf16.mxu0 %v721_v50  ;;  %v1138_v50 = vld [vmem:[%s1789_s9 + $0x3] ss:$0 sm:$0xff] }
 0x28d   :  { %884 = vmatmul.mubr.bf16.vlgmr.msra.gmra.mrb[8].mxu0 %v719_v58 }
 0x35c   :  { %v1189_v7 = vpop.f32.mrb[8].mxu1 }
 0x35d   :  { %v1190_v9 = vpop.f32.mrb[9].mxu1 }
 0x35e   :  { %v1191_v57 = vadd.f32 %v1190_v9, %v1189_v7  ;;  %v1192_v63 = vpop.f32.mrb[10].mxu1  ;;  %v1135_v9 = vld [vmem:[%s1789_s9 + $0x4] ss:$0 sm:$0xff] }
 0x35f   :  { %v1193_v10 = vpop.f32.mrb[11].mxu1 }
 0x360   :  { %v907_v2 = vmul.f32 %v1191_v57, %v1130_v46  ;;  %v1194_v11 = vadd.f32 %v1193_v10, %v1192_v63  ;;  %v1183_v4 = vpop.f32.mrb[8].mxu0  ;;  %v1012_v10 = vunpack.c.0.s8 %v1011_v6 }
 0x361   :  { %v1184_v5 = vpop.f32.mrb[9].mxu0 }
 0x362   :  { %v908_v20 = vmul.f32 %v1194_v11, %v1130_v46  ;;  %v1185_v41 = vadd.f32 %v1184_v5, %v1183_v4  ;;  %v1186_v47 = vpop.f32.mrb[10].mxu0  ;;  %v1723_v14 = vadd.f32 %v1131_v1, %v907_v2  ;;  %v1015_v4 = vsub.s32 %v1012_v10, %v1478_v44 }
 0x363   :  { %v1187_v58 = vpop.f32.mrb[11].mxu0 }
 0x364   :  { %v1725_v12 = vadd.f32 %v1131_v1, %v908_v20  ;;  %v905_v8 = vmul.f32 %v1185_v41, %v1130_v46  ;;  %v1188_v13 = vadd.f32 %v1187_v58, %v1186_v47  ;;  %v1046_v58 = vunpack.c.l.bf16 %v1424_v26 }
 0x366   :  { %v925_v15 = vadd.f32 %v1725_v12, %v1723_v14  ;;  %v906_v16 = vmul.f32 %v1188_v13, %v1130_v46  ;;  %v1729_v18 = vadd.f32 %v1131_v1, %v905_v8  ;;  %v1047_v8 = vunpack.c.h.bf16 %v1424_v26 }
 0x368   :  { %v926_v17 = vrot.slane %v925_v15, 4  ;;  %v1731_v19 = vadd.f32 %v1131_v1, %v906_v16  ;;  %v1048_v16 = vunpack.c.l.bf16 %v1433_v28 }
 0x36a   :  { %v927_v21 = vadd.f32 %v926_v17, %v925_v15  ;;  %v918_v23 = vadd.f32 %v1731_v19, %v1729_v18  ;;  %v1049_v17 = vunpack.c.h.bf16 %v1433_v28 }
 0x36c   :  { %v928_v36 = vrot.slane %v927_v21, 2  ;;  %v919_v24 = vrot.slane %v918_v23, 4 }
 0x36e   :  { %v920_v49 = vadd.f32 %v919_v24, %v918_v23  ;;  %v929_v25 = vadd.f32 %v928_v36, %v927_v21 }
 0x370   :  { %v921_v38 = vrot.slane %v920_v49, 2  ;;  %v930_v29 = vrot.slane %v929_v25, 1 }
 0x372   :  { %v922_v31 = vadd.f32 %v921_v38, %v920_v49  ;;  %v931_v34 = vadd.f32 %v930_v29, %v929_v25 }
 0x374   :  { %v923_v22 = vrot.slane %v922_v31, 1  ;;  %v979_v51 = vmul.f32 %v1136_v30, %v931_v34  ;;  %v939_v42 = vmul.f32 %v1132_v33, %v931_v34 }
 0x376   :  { %v924_v35 = vadd.f32 %v923_v22, %v922_v31  ;;  %v982_v39 = vrot.slane %v979_v51, 7  ;;  %v942_v40 = vrot.slane %v939_v42, 7 }
 0x378   :  { %v978_v37 = vmul.f32 %v1136_v30, %v924_v35  ;;  %v938_v43 = vmul.f32 %v1132_v33, %v924_v35 }
 0x37a   :  { %v983_v0 = vsel %vm943_vm2, %v982_v39, %v978_v37  ;;  %v944_v48 = vsel %vm943_vm2, %v942_v40, %v938_v43 }
 0x37b   :  { %v985_v54 = vsel %vm946_vm3, %v983_v0, 0.0  ;;  %v947_v55 = vsel %vm946_vm3, %v944_v48, 0.0 }
 0x37c   :  { %986 = vadd.xlane.f32.xlu1 %v985_v54  ;;  %948 = vadd.xlane.f32.xlu0 %v947_v55 }
 0x409   :  { %v987_v52 = vpop.xlane.xlu1 %986  ;;  %v949_v59 = vpop.xlane.xlu0 %948 }
 0x40a   :  { %v993_v60 = vadd.f32 %v1137_v56, %v987_v52  ;;  %v955_v61 = vadd.f32 %v1133_v27, %v949_v59 }
 0x40c   :  { %v994_v62 = vmax.f32 %v993_v60, 0.0  ;;  %v956_v3 = vmax.f32 %v955_v61, 0.0 }
 0x40e   :  { %998 = vperm.xlu1 %1216, %v994_v62   ;;  %960 = vperm.xlu0 %1215, %v956_v3  }
 0x48d   :  { %v999_v7 = vpop.permute.xlu1 %998  ;;  %v961_v46 = vpop.permute.xlu0 %960 }
 0x48e   :  { %v967_v57 = vmul.f32 %v1134_v32, %v961_v46  ;;  %v1005_v63 = vmul.f32 %v1138_v50, %v999_v7 }
 0x490   :  { %v972_v2 = vadd.f32 %v1135_v9, %v967_v57 }
 0x492   :  { %v1006_v11 = vadd.f32 %v1005_v63, %v972_v2 }
 0x494   :  { %v1007_v1 = vmax.f32 %v1006_v11, 0.0 }
 0x496   :  { %v1008_v5 = vmin.f32 %v1007_v1, 1.0 }
 0x498   :  { %v1016_v20 = vrot.slane %v1008_v5, %v1015_v4 }
 0x49a   :  { %v1017_v41 = vcombine.high %v1016_v20, %v1016_v20  ;;  %v1024_v47 = vrot.slane %v1016_v20, %v1015_v4 }
 0x49c   :  { %v1031_v13 = vrot.slane %v1017_v41, %v1015_v4  ;;  %v1035_v15 = vrot.slane %v1024_v47, %v1481_v45 }
 0x49e   :  { %v1039_v21 = vrot.slane %v1031_v13, %v1481_v45  ;;  %v1042_v44 = vmul.f32 %v1035_v15, %v1729_v18  ;;  %v1043_v23 = vmul.f32 %v1035_v15, %v1731_v19 }
 0x4a0   :  { %v1044_v36 = vmul.f32 %v1039_v21, %v1723_v14  ;;  %v1045_v24 = vmul.f32 %v1039_v21, %v1725_v12  ;;  %v1050_v49 = vadd.f32 %v1046_v58, %v1042_v44  ;;  %v1051_v25 = vadd.f32 %v1047_v8, %v1043_v23 }
 0x4a2   :  { %v1052_v26 = vadd.f32 %v1048_v16, %v1044_v36  ;;  %v1053_v38 = vadd.f32 %v1049_v17, %v1045_v24  ;;  %1054 = vst [vmem:[%s1791_s12] sm:$0xff] %v1050_v49  ;;  %1055 = vst [vmem:[%s1791_s12 + $0x8] sm:$0xff] %v1051_v25 }
 0x4a4   :  { %1056 = vst [vmem:[%s1791_s12 + $0x10] sm:$0xff] %v1052_v26  ;;  %1057 = vst [vmem:[%s1791_s12 + $0x18] sm:$0xff] %v1053_v38 }

</bundles_post_ra>
